<compile_context>
chip_gen: v5e
topology: v5e:2x2
jax: 0.10.0
libtpu: 0.0.40
codegen_flags: <defaults>
</compile_context>

<pallas_src>
import functools

import jax
import jax.numpy as jnp
from jax.experimental import pallas as pl
from jax.experimental.pallas import tpu as pltpu

_BN_EPS = 1e-5
_LANE = 128


def _round_up(n, m):
    return ((n + m - 1) // m) * m


def _fused_mlp_kernel(*refs, true_dims, activations):
    """Fused Mlp forward: Linear + BatchNorm1d(train stats) + activation per layer.

    refs = (x_ref, [wt_ref, gamma_ref, beta_ref] * L, o_ref)
      x_ref    : (B, in_dim)            f32 (unpadded; Mosaic pads K internally)
      wt_ref   : (in_rows_i, out_pad_i) bf16, W^T; layer 0 has true in_dim rows,
                 later layers have 128-padded rows with zero padding rows.
      gamma/beta: (1, out_pad_i)        f32 (gamma padded with 1, beta with 0)
      o_ref    : (B, out_pad_L)         f32 (lane-dense; wrapper slices)
    """
    x_ref = refs[0]
    o_ref = refs[-1]
    n_layers = len(activations)

    h = x_ref[...]
    inv_b = 1.0 / h.shape[0]
    for li in range(n_layers):
        wt = refs[1 + 3 * li][...]          # bf16
        gamma = refs[2 + 3 * li][...]       # f32
        beta = refs[3 + 3 * li][...]        # f32
        out_true = true_dims[li]
        out_pad = wt.shape[1]

        # Linear on the MXU: bf16 operands, f32 accumulation.  Bias omitted:
        # it is exactly cancelled by the BatchNorm batch-mean subtraction.
        y = jnp.dot(h.astype(jnp.bfloat16), wt,
                    preferred_element_type=jnp.float32)

        # BatchNorm1d (training-mode stats) in scale/shift form: two
        # independent per-feature reductions, then one fused y*scale+shift.
        # Padded lanes: zero weight cols -> y==0 -> mean=var=0 -> output 0.
        s = jnp.sum(y, axis=0, keepdims=True)
        ss = jnp.sum(y * y, axis=0, keepdims=True)
        mean = s * inv_b
        var = jnp.maximum(ss * inv_b - mean * mean, 0.0)
        scale = gamma * jax.lax.rsqrt(var + _BN_EPS)
        shift = beta - mean * scale
        y = y * scale + shift

        act = activations[li]
        if act == "relu":
            h = jnp.maximum(y, 0.0)
        elif act == "sigmoid":
            # EUP logistic.  Padded lanes become 0.5; harmless because the
            # next layer's padded weight rows are zero.
            h = jax.nn.sigmoid(y)
        elif act == "logsoftmax":
            if out_pad > out_true:
                lane = jax.lax.broadcasted_iota(jnp.int32, y.shape, 1)
                valid = lane < out_true
                y = jnp.where(valid, y, -jnp.inf)
            m = jnp.max(y, axis=1, keepdims=True)
            z = y - m
            lse = jnp.log(jnp.sum(jnp.exp(z), axis=1, keepdims=True))
            h = z - lse
            if out_pad > out_true:
                # Padded lanes are -inf here; zero them so a subsequent matmul
                # cannot produce 0 * -inf = NaN.
                h = jnp.where(valid, h, 0.0)
        else:
            raise ValueError(f"unknown activation: {act}")

    o_ref[...] = h.astype(o_ref.dtype)


def init_mlp_params(key, features):
    """Deterministic parameter init matching the shapes of the torch module."""
    assert len(features) >= 4, "4 features is minimum (3 layers total and 1 hidden)."
    params = []
    for i in range(len(features) - 1):
        fan_in, fan_out = features[i], features[i + 1]
        key, kw, kb = jax.random.split(key, 3)
        bound = 1.0 / jnp.sqrt(jnp.float32(fan_in))
        w = jax.random.uniform(kw, (fan_out, fan_in), jnp.float32, -bound, bound)
        b = jax.random.uniform(kb, (fan_out,), jnp.float32, -bound, bound)
        gamma = jnp.ones((fan_out,), jnp.float32)   # BatchNorm1d weight init
        beta = jnp.zeros((fan_out,), jnp.float32)   # BatchNorm1d bias init
        params.append((w, b, gamma, beta))
    return params


def prepare_mlp_params(params):
    """One-time param prep: transpose W to (in, out), cast to bf16, pad lanes.

    Layer 0 keeps its true input width (x arrives unpadded); later layers pad
    their input rows to 128 with ZERO rows so padded activation lanes (e.g.
    sigmoid's 0.5) cannot contribute.  Output columns are zero-padded to 128.
    The Linear bias is intentionally dropped (cancelled exactly by BatchNorm's
    batch-mean subtraction in training mode).
    Returns (layers, true_dims): layers = tuple of (W^T bf16, gamma, beta).
    """
    layers = []
    true_dims = []
    for li, (w, _b, gamma, beta) in enumerate(params):
        out_dim, in_dim = w.shape
        in_rows = in_dim if li == 0 else _round_up(in_dim, _LANE)
        out_pad = _round_up(out_dim, _LANE)
        wt = jnp.zeros((in_rows, out_pad), jnp.bfloat16)
        wt = wt.at[:in_dim, :out_dim].set(w.T.astype(jnp.bfloat16))
        g = jnp.ones((1, out_pad), jnp.float32).at[0, :out_dim].set(gamma)
        bt = jnp.zeros((1, out_pad), jnp.float32).at[0, :out_dim].set(beta)
        layers.append((wt, g, bt))
        true_dims.append(out_dim)
    return tuple(layers), tuple(true_dims)


@functools.partial(jax.jit, static_argnames=("true_dims", "activations"))
def _mlp_forward_padded(x, layers, *, true_dims, activations):
    B = x.shape[0]
    h = x.reshape(B, -1).astype(jnp.float32)          # x.view(x.size(0), -1)

    args = [h]
    for wt, g, bt in layers:
        args.extend((wt, g, bt))

    out_pad = layers[-1][0].shape[1]

    # Advisory cost estimate so XLA can schedule around the custom call.
    flops = 2 * B * sum(int(wt.shape[0]) * int(wt.shape[1]) for wt, _, _ in layers)
    transcendentals = B * sum(
        int(layers[i][0].shape[1])
        for i, a in enumerate(activations) if a in ("sigmoid", "logsoftmax"))
    bytes_accessed = (
        h.size * 4 + B * out_pad * 4 +
        sum(int(wt.size) * wt.dtype.itemsize + int(g.size) * 4 + int(bt.size) * 4
            for wt, g, bt in layers))
    cost = pl.CostEstimate(flops=flops, transcendentals=transcendentals,
                           bytes_accessed=bytes_accessed)

    vmem = pl.BlockSpec(memory_space=pltpu.MemorySpace.VMEM)
    out = pl.pallas_call(
        functools.partial(_fused_mlp_kernel, true_dims=true_dims,
                          activations=activations),
        out_shape=jax.ShapeDtypeStruct((B, out_pad), jnp.float32),
        in_specs=[vmem] * len(args),
        out_specs=vmem,
        cost_estimate=cost,
    )(*args)
    return out[:, : true_dims[-1]]


def mlp_forward(x, prepared, activation="relu", out_activation="logsoftmax"):
    """Full Mlp forward on pre-prepared (transposed + bf16 + padded) params."""
    layers, true_dims = prepared
    acts = tuple([activation] * (len(layers) - 1) + [out_activation])
    return _mlp_forward_padded(x, layers, true_dims=true_dims, activations=acts)


def _reference_forward(x, params, activation="relu", out_activation="logsoftmax"):
    """Pure-JAX f32 reference (with bias, like torch) for correctness checking."""
    def layer(h, p, act):
        w, b, g, bt = p
        y = h @ w.T + b
        mean = jnp.mean(y, axis=0, keepdims=True)
        var = jnp.mean((y - mean) ** 2, axis=0, keepdims=True)
        y = (y - mean) / jnp.sqrt(var + _BN_EPS) * g + bt
        if act == "relu":
            return jnp.maximum(y, 0.0)
        if act == "sigmoid":
            return jax.nn.sigmoid(y)
        return jax.nn.log_softmax(y, axis=1)

    h = x.reshape(x.shape[0], -1).astype(jnp.float32)
    for p in params[:-1]:
        h = layer(h, p, activation)
    return layer(h, params[-1], out_activation)


if __name__ == "__main__":
    key = jax.random.PRNGKey(0)
    key, kx = jax.random.split(key)

    # Small shapes: batch=8, "image" input (2, 4, 4) flattened to 32 features.
    features = [32, 64, 48, 16]          # [in, h1, h2, out] (>= 4 entries)
    x = jax.random.normal(kx, (8, 2, 4, 4), jnp.float32)

    params = init_mlp_params(key, features)
    prepared = prepare_mlp_params(params)   # one-time transpose + bf16 + pad

    out = mlp_forward(x, prepared)
    out = jax.block_until_ready(out)

    ref = _reference_forward(x, params)
    assert out.shape == (8, features[-1])
    # Tolerance loosened vs. the f32 reference because the matmul operands are
    # bf16 (BatchNorm renormalizes most of the perturbation).
    assert jnp.allclose(out, ref, atol=2e-2, rtol=2e-2), "mismatch vs reference"
    assert bool(jnp.isfinite(out).all()), "non-finite output"

    print("KERNEL_OK")
</pallas_src>

<mosaic_0001>
module attributes {stable_mosaic.version = 11 : i64} {
  func.func @_fused_mlp_kernel(%arg0: memref<8x32xf32, #tpu.memory_space<vmem>>, %arg1: memref<32x128xbf16, #tpu.memory_space<vmem>>, %arg2: memref<1x128xf32, #tpu.memory_space<vmem>>, %arg3: memref<1x128xf32, #tpu.memory_space<vmem>>, %arg4: memref<128x128xbf16, #tpu.memory_space<vmem>>, %arg5: memref<1x128xf32, #tpu.memory_space<vmem>>, %arg6: memref<1x128xf32, #tpu.memory_space<vmem>>, %arg7: memref<128x128xbf16, #tpu.memory_space<vmem>>, %arg8: memref<1x128xf32, #tpu.memory_space<vmem>>, %arg9: memref<1x128xf32, #tpu.memory_space<vmem>>, %arg10: memref<8x128xf32, #tpu.memory_space<vmem>>) attributes {dimension_semantics = [], scalar_prefetch = 0 : i64, scratch_operands = 0 : i64, tpu.core_type = #tpu.core_type<tc>} {
    %c0 = arith.constant 0 : index
    %c0_0 = arith.constant 0 : index
    %0 = vector.load %arg0[%c0, %c0_0] : memref<8x32xf32, #tpu.memory_space<vmem>>, vector<8x32xf32>
    %c0_1 = arith.constant 0 : index
    %c0_2 = arith.constant 0 : index
    %1 = vector.load %arg1[%c0_1, %c0_2] : memref<32x128xbf16, #tpu.memory_space<vmem>>, vector<32x128xbf16>
    %c0_3 = arith.constant 0 : index
    %c0_4 = arith.constant 0 : index
    %2 = vector.load %arg2[%c0_3, %c0_4] : memref<1x128xf32, #tpu.memory_space<vmem>>, vector<1x128xf32>
    %c0_5 = arith.constant 0 : index
    %c0_6 = arith.constant 0 : index
    %3 = vector.load %arg3[%c0_5, %c0_6] : memref<1x128xf32, #tpu.memory_space<vmem>>, vector<1x128xf32>
    %4 = arith.truncf %0 : vector<8x32xf32> to vector<8x32xbf16>
    %cst = arith.constant dense<0.000000e+00> : vector<8x128xf32>
    %5 = tpu.matmul %4, %1, %cst {dimension_numbers = #tpu.dot_dimension_numbers<[1], [0], [0], [1], [0, 0, 1, 1], [], []>} : vector<8x32xbf16>, vector<32x128xbf16>, vector<8x128xf32> -> vector<8x128xf32>
    %cst_7 = arith.constant dense<0.000000e+00> : vector<128xf32>
    %6 = vector.multi_reduction <add>, %5, %cst_7 [0] : vector<8x128xf32> to vector<128xf32>
    %7 = vector.shape_cast %6 : vector<128xf32> to vector<1x128xf32>
    %8 = arith.mulf %5, %5 : vector<8x128xf32>
    %cst_8 = arith.constant dense<0.000000e+00> : vector<128xf32>
    %9 = vector.multi_reduction <add>, %8, %cst_8 [0] : vector<8x128xf32> to vector<128xf32>
    %10 = vector.shape_cast %9 : vector<128xf32> to vector<1x128xf32>
    %cst_9 = arith.constant 1.250000e-01 : f32
    %11 = vector.broadcast %cst_9 : f32 to vector<1x128xf32>
    %12 = arith.mulf %7, %11 : vector<1x128xf32>
    %cst_10 = arith.constant 1.250000e-01 : f32
    %13 = vector.broadcast %cst_10 : f32 to vector<1x128xf32>
    %14 = arith.mulf %10, %13 : vector<1x128xf32>
    %15 = arith.mulf %12, %12 : vector<1x128xf32>
    %16 = arith.subf %14, %15 : vector<1x128xf32>
    %cst_11 = arith.constant 0.000000e+00 : f32
    %17 = vector.broadcast %cst_11 : f32 to vector<1x128xf32>
    %18 = arith.maximumf %16, %17 : vector<1x128xf32>
    %cst_12 = arith.constant 9.99999974E-6 : f32
    %19 = vector.broadcast %cst_12 : f32 to vector<1x128xf32>
    %20 = arith.addf %18, %19 : vector<1x128xf32>
    %21 = math.rsqrt %20 : vector<1x128xf32>
    %22 = arith.mulf %2, %21 : vector<1x128xf32>
    %23 = arith.mulf %12, %22 : vector<1x128xf32>
    %24 = arith.subf %3, %23 : vector<1x128xf32>
    %25 = vector.broadcast %22 : vector<1x128xf32> to vector<8x128xf32>
    %26 = arith.mulf %5, %25 : vector<8x128xf32>
    %27 = vector.broadcast %24 : vector<1x128xf32> to vector<8x128xf32>
    %28 = arith.addf %26, %27 : vector<8x128xf32>
    %cst_13 = arith.constant 0.000000e+00 : f32
    %29 = vector.broadcast %cst_13 : f32 to vector<8x128xf32>
    %30 = arith.maximumf %28, %29 : vector<8x128xf32>
    %c0_14 = arith.constant 0 : index
    %c0_15 = arith.constant 0 : index
    %31 = vector.load %arg4[%c0_14, %c0_15] : memref<128x128xbf16, #tpu.memory_space<vmem>>, vector<128x128xbf16>
    %c0_16 = arith.constant 0 : index
    %c0_17 = arith.constant 0 : index
    %32 = vector.load %arg5[%c0_16, %c0_17] : memref<1x128xf32, #tpu.memory_space<vmem>>, vector<1x128xf32>
    %c0_18 = arith.constant 0 : index
    %c0_19 = arith.constant 0 : index
    %33 = vector.load %arg6[%c0_18, %c0_19] : memref<1x128xf32, #tpu.memory_space<vmem>>, vector<1x128xf32>
    %34 = arith.truncf %30 : vector<8x128xf32> to vector<8x128xbf16>
    %cst_20 = arith.constant dense<0.000000e+00> : vector<8x128xf32>
    %35 = tpu.matmul %34, %31, %cst_20 {dimension_numbers = #tpu.dot_dimension_numbers<[1], [0], [0], [1], [0, 0, 1, 1], [], []>} : vector<8x128xbf16>, vector<128x128xbf16>, vector<8x128xf32> -> vector<8x128xf32>
    %cst_21 = arith.constant dense<0.000000e+00> : vector<128xf32>
    %36 = vector.multi_reduction <add>, %35, %cst_21 [0] : vector<8x128xf32> to vector<128xf32>
    %37 = vector.shape_cast %36 : vector<128xf32> to vector<1x128xf32>
    %38 = arith.mulf %35, %35 : vector<8x128xf32>
    %cst_22 = arith.constant dense<0.000000e+00> : vector<128xf32>
    %39 = vector.multi_reduction <add>, %38, %cst_22 [0] : vector<8x128xf32> to vector<128xf32>
    %40 = vector.shape_cast %39 : vector<128xf32> to vector<1x128xf32>
    %cst_23 = arith.constant 1.250000e-01 : f32
    %41 = vector.broadcast %cst_23 : f32 to vector<1x128xf32>
    %42 = arith.mulf %37, %41 : vector<1x128xf32>
    %cst_24 = arith.constant 1.250000e-01 : f32
    %43 = vector.broadcast %cst_24 : f32 to vector<1x128xf32>
    %44 = arith.mulf %40, %43 : vector<1x128xf32>
    %45 = arith.mulf %42, %42 : vector<1x128xf32>
    %46 = arith.subf %44, %45 : vector<1x128xf32>
    %cst_25 = arith.constant 0.000000e+00 : f32
    %47 = vector.broadcast %cst_25 : f32 to vector<1x128xf32>
    %48 = arith.maximumf %46, %47 : vector<1x128xf32>
    %cst_26 = arith.constant 9.99999974E-6 : f32
    %49 = vector.broadcast %cst_26 : f32 to vector<1x128xf32>
    %50 = arith.addf %48, %49 : vector<1x128xf32>
    %51 = math.rsqrt %50 : vector<1x128xf32>
    %52 = arith.mulf %32, %51 : vector<1x128xf32>
    %53 = arith.mulf %42, %52 : vector<1x128xf32>
    %54 = arith.subf %33, %53 : vector<1x128xf32>
    %55 = vector.broadcast %52 : vector<1x128xf32> to vector<8x128xf32>
    %56 = arith.mulf %35, %55 : vector<8x128xf32>
    %57 = vector.broadcast %54 : vector<1x128xf32> to vector<8x128xf32>
    %58 = arith.addf %56, %57 : vector<8x128xf32>
    %cst_27 = arith.constant 0.000000e+00 : f32
    %59 = vector.broadcast %cst_27 : f32 to vector<8x128xf32>
    %60 = arith.maximumf %58, %59 : vector<8x128xf32>
    %c0_28 = arith.constant 0 : index
    %c0_29 = arith.constant 0 : index
    %61 = vector.load %arg7[%c0_28, %c0_29] : memref<128x128xbf16, #tpu.memory_space<vmem>>, vector<128x128xbf16>
    %c0_30 = arith.constant 0 : index
    %c0_31 = arith.constant 0 : index
    %62 = vector.load %arg8[%c0_30, %c0_31] : memref<1x128xf32, #tpu.memory_space<vmem>>, vector<1x128xf32>
    %c0_32 = arith.constant 0 : index
    %c0_33 = arith.constant 0 : index
    %63 = vector.load %arg9[%c0_32, %c0_33] : memref<1x128xf32, #tpu.memory_space<vmem>>, vector<1x128xf32>
    %64 = arith.truncf %60 : vector<8x128xf32> to vector<8x128xbf16>
    %cst_34 = arith.constant dense<0.000000e+00> : vector<8x128xf32>
    %65 = tpu.matmul %64, %61, %cst_34 {dimension_numbers = #tpu.dot_dimension_numbers<[1], [0], [0], [1], [0, 0, 1, 1], [], []>} : vector<8x128xbf16>, vector<128x128xbf16>, vector<8x128xf32> -> vector<8x128xf32>
    %cst_35 = arith.constant dense<0.000000e+00> : vector<128xf32>
    %66 = vector.multi_reduction <add>, %65, %cst_35 [0] : vector<8x128xf32> to vector<128xf32>
    %67 = vector.shape_cast %66 : vector<128xf32> to vector<1x128xf32>
    %68 = arith.mulf %65, %65 : vector<8x128xf32>
    %cst_36 = arith.constant dense<0.000000e+00> : vector<128xf32>
    %69 = vector.multi_reduction <add>, %68, %cst_36 [0] : vector<8x128xf32> to vector<128xf32>
    %70 = vector.shape_cast %69 : vector<128xf32> to vector<1x128xf32>
    %cst_37 = arith.constant 1.250000e-01 : f32
    %71 = vector.broadcast %cst_37 : f32 to vector<1x128xf32>
    %72 = arith.mulf %67, %71 : vector<1x128xf32>
    %cst_38 = arith.constant 1.250000e-01 : f32
    %73 = vector.broadcast %cst_38 : f32 to vector<1x128xf32>
    %74 = arith.mulf %70, %73 : vector<1x128xf32>
    %75 = arith.mulf %72, %72 : vector<1x128xf32>
    %76 = arith.subf %74, %75 : vector<1x128xf32>
    %cst_39 = arith.constant 0.000000e+00 : f32
    %77 = vector.broadcast %cst_39 : f32 to vector<1x128xf32>
    %78 = arith.maximumf %76, %77 : vector<1x128xf32>
    %cst_40 = arith.constant 9.99999974E-6 : f32
    %79 = vector.broadcast %cst_40 : f32 to vector<1x128xf32>
    %80 = arith.addf %78, %79 : vector<1x128xf32>
    %81 = math.rsqrt %80 : vector<1x128xf32>
    %82 = arith.mulf %62, %81 : vector<1x128xf32>
    %83 = arith.mulf %72, %82 : vector<1x128xf32>
    %84 = arith.subf %63, %83 : vector<1x128xf32>
    %85 = vector.broadcast %82 : vector<1x128xf32> to vector<8x128xf32>
    %86 = arith.mulf %65, %85 : vector<8x128xf32>
    %87 = vector.broadcast %84 : vector<1x128xf32> to vector<8x128xf32>
    %88 = arith.addf %86, %87 : vector<8x128xf32>
    %89 = tpu.iota {dimensions = array<i32: 1>} : vector<8x128xi32>
    %c16_i32 = arith.constant 16 : i32
    %90 = vector.broadcast %c16_i32 : i32 to vector<8x128xi32>
    %91 = arith.cmpi slt, %89, %90 : vector<8x128xi32>
    %cst_41 = arith.constant 0xFF800000 : f32
    %92 = vector.broadcast %cst_41 : f32 to vector<8x128xf32>
    %93 = arith.select %91, %88, %92 : vector<8x128xi1>, vector<8x128xf32>
    %cst_42 = arith.constant dense<0xFF800000> : vector<8xf32>
    %94 = vector.multi_reduction <maximumf>, %93, %cst_42 [1] : vector<8x128xf32> to vector<8xf32>
    %95 = vector.shape_cast %94 : vector<8xf32> to vector<8x1xf32>
    %96 = vector.broadcast %95 : vector<8x1xf32> to vector<8x128xf32>
    %97 = arith.subf %93, %96 : vector<8x128xf32>
    %98 = math.exp %97 : vector<8x128xf32>
    %cst_43 = arith.constant dense<0.000000e+00> : vector<8xf32>
    %99 = vector.multi_reduction <add>, %98, %cst_43 [1] : vector<8x128xf32> to vector<8xf32>
    %100 = vector.shape_cast %99 : vector<8xf32> to vector<8x1xf32>
    %101 = math.log %100 : vector<8x1xf32>
    %102 = vector.broadcast %101 : vector<8x1xf32> to vector<8x128xf32>
    %103 = arith.subf %97, %102 : vector<8x128xf32>
    %cst_44 = arith.constant 0.000000e+00 : f32
    %104 = vector.broadcast %cst_44 : f32 to vector<8x128xf32>
    %105 = arith.select %91, %103, %104 : vector<8x128xi1>, vector<8x128xf32>
    %c0_45 = arith.constant 0 : index
    %c0_46 = arith.constant 0 : index
    %106 = vector.load %arg10[%c0_45, %c0_46] : memref<8x128xf32, #tpu.memory_space<vmem>>, vector<8x128xf32>
    tpu.vector_store %arg10[%c0_45, %c0_46], %105 {strides = array<i32>} : memref<8x128xf32, #tpu.memory_space<vmem>>, vector<8x128xf32>,
    return
  }
}

</mosaic_0001>

<bundles_post_ra>
// kernel: _mlp_forward_padded.1
= control target key start
LH: loop header
LB: loop body
LE: loop exit
PB: predicated region body
PF: predicated region fallthrough
CT: control target
= control target key end

     0   :  { %15 = vsyncpa [#allocation3], 0  ;;  %s704_s0 = inlined_call_operand.vmem [shape: f32[8,32], index: 0, kind: input, shape index: {}]   ;;  %s705_s1 = inlined_call_operand.vmem [shape: bf16[32,128], index: 1, kind: input, shape index: {}]   ;;  %s706_s2 = inlined_call_operand.vmem [shape: f32[1,128], index: 2, kind: input, shape index: {}]   ;;  %s707_s3 = inlined_call_operand.vmem [shape: f32[1,128], index: 3, kind: input, shape index: {}]   ;;  %s708_s4 = inlined_call_operand.hbm [shape: bf16[128,128], index: 4, kind: input, shape index: {}]   ;;  %s709_s5 = inlined_call_operand.vmem [shape: f32[1,128], index: 5, kind: input, shape index: {}]   ;;  %s710_s6 = inlined_call_operand.vmem [shape: f32[1,128], index: 6, kind: input, shape index: {}]   ;;  %s711_s7 = inlined_call_operand.hbm [shape: bf16[128,128], index: 7, kind: input, shape index: {}]   ;;  %s712_s8 = inlined_call_operand.vmem [shape: f32[1,128], index: 8, kind: input, shape index: {}]   ;;  %s713_s9 = inlined_call_operand.vmem [shape: f32[1,128], index: 9, kind: input, shape index: {}]   ;;  %s714_s10 = inlined_call_operand.hbm [shape: f32[8,128], index: 10, kind: output, shape index: {}]  }
   0x1   :  { %16 = vsyncpa [#allocation6], 0 }
   0x2   :  { %17 = vsyncpa [#allocation4], 0  ;;  %s30_s15 = sshll.u32 %s708_s4, 4  ;;  %s606_s16 = smov [#allocation2]   ;;  %s31_s15 = int_to_ptr.hbm [resolvable:$true] %s30_s15 }
   0x3   :  { %s32_s17 = sshll.u32 %s606_s16, 4  ;;  %s47_s20 = sshll.u32 %s711_s7, 4  ;;  %s33_s17 = int_to_ptr.vmem [resolvable:$true] %s32_s17  ;;  %s48_s20 = int_to_ptr.hbm [resolvable:$true] %s47_s20 }
   0x4   :  { %s607_s21 = smov 64   ;;  %s608_s22 = smov 4  }
   0x5   :  { %38 = dma.hbm_to_vmem [thread:$0]  %s31_s15, 1024, %s33_s17, [#allocation3], %s607_s21, %s607_s21, %s608_s22  }
   0x6   :  { %s609_s23 = smov [#allocation5]  }
   0x7   :  { %s49_s24 = sshll.u32 %s609_s23, 4  ;;  %s50_s24 = int_to_ptr.vmem [resolvable:$true] %s49_s24 }
   0x8   :  { %55 = dma.hbm_to_vmem [thread:$0]  %s48_s20, 1024, %s50_s24, [#allocation6], %s607_s21, %s607_s21, %s608_s22  }
   0x9   :  { %600 = dma.done.wait [#allocation3], 1024  }
   0xa   :  { %601 = vsyncadd [#allocation3], 4294966272 }
   0xb   :  { %602 = dma.done.wait [#allocation6], 1024  }
   0xc   :  { %603 = vsyncadd [#allocation6], 4294966272  ;;  %v496_v0 = vld [vmem:[%s705_s1 + $0x8] sm:$0xff]  ;;  %v495_v1 = vld [vmem:[%s705_s1] sm:$0xff]  ;;  %vm89_vm0 = vcmask 261120   ;;  %s411_s17 = sshll.u32 %s714_s10, 4  ;;  %s412_s17 = int_to_ptr.hbm [resolvable:$true] %s411_s17 }
   0xd   :  { %99 = vmatpush.bf16.msra.mxu0 %v496_v0  ;;  %v69_v2 = vld [vmem:[%s704_s0] sm:$0xff]  ;;  %v504_v4 = vld [vmem:[#allocation2 + $0x38] sm:$0xff]  ;;  %v503_v5 = vld [vmem:[#allocation2 + $0x30] sm:$0xff] }
   0xe   :  { %v76_v3 = vpack.c.bf16 %v69_v2, %v69_v2  ;;  %214 = vmatpush.bf16.msra.mxu1 %v504_v4  ;;  %v502_v6 = vld [vmem:[#allocation2 + $0x28] sm:$0xff]  ;;  %v501_v7 = vld [vmem:[#allocation2 + $0x20] sm:$0xff]  ;;  %v500_v8 = vld [vmem:[#allocation2 + $0x18] sm:$0xff] }
   0xf   :  { %v499_v12 = vld [vmem:[#allocation2 + $0x10] sm:$0xff]  ;;  %v498_v17 = vld [vmem:[#allocation2 + $0x8] sm:$0xff]  ;;  %v497_v23 = vld [vmem:[#allocation2] sm:$0xff] }
  0x10   :  { %v74_v38 = vld [vmem:[%s706_s2] sm:$0x1]  ;;  %v512_v51 = vld [vmem:[#allocation5 + $0x38] sm:$0xff]  ;;  %v511_v52 = vld [vmem:[#allocation5 + $0x30] sm:$0xff] }
  0x11   :  { %100 = vmatpush.bf16.msra.mxu0 %v495_v1  ;;  %v75_v42 = vld [vmem:[%s707_s3] sm:$0x1]  ;;  %335 = vmatpush.bf16.msra.mxu2 %v512_v51  ;;  %v510_v53 = vld [vmem:[#allocation5 + $0x28] sm:$0xff]  ;;  %v508_v55 = vld [vmem:[#allocation5 + $0x18] sm:$0xff] }
  0x12   :  { %215 = vmatpush.bf16.msra.mxu1 %v503_v5  ;;  %v509_v54 = vld [vmem:[#allocation5 + $0x20] sm:$0xff]  ;;  %v507_v59 = vld [vmem:[#allocation5 + $0x10] sm:$0xff]  ;;  %v506_v0 = vld [vmem:[#allocation5 + $0x8] sm:$0xff] }
  0x14   :  { %430 = vmatmul.msk.bf16.vlgmr.msra.gmra.mxu0 %vm89_vm0, %v76_v3 }
  0x15   :  { %336 = vmatpush.bf16.msra.mxu2 %v511_v52 }
  0x16   :  { %216 = vmatpush.bf16.msra.mxu1 %v502_v6  ;;  %v505_v6 = vld [vmem:[#allocation5] sm:$0xff] }
  0x19   :  { %337 = vmatpush.bf16.msra.mxu2 %v510_v53 }
  0x1a   :  { %217 = vmatpush.bf16.msra.mxu1 %v501_v7 }
  0x1d   :  { %338 = vmatpush.bf16.msra.mxu2 %v509_v54 }
  0x1e   :  { %218 = vmatpush.bf16.msra.mxu1 %v500_v8 }
  0x21   :  { %339 = vmatpush.bf16.msra.mxu2 %v508_v55 }
  0x22   :  { %219 = vmatpush.bf16.msra.mxu1 %v499_v12 }
  0x25   :  { %340 = vmatpush.bf16.msra.mxu2 %v507_v59 }
  0x26   :  { %220 = vmatpush.bf16.msra.mxu1 %v498_v17 }
  0x29   :  { %341 = vmatpush.bf16.msra.mxu2 %v506_v0 }
  0x2a   :  { %221 = vmatpush.bf16.msra.mxu1 %v497_v23 }
  0x2d   :  { %342 = vmatpush.bf16.msra.mxu2 %v505_v6 }
  0x91   :  { %v102_v9 = vpop.f32.mrf.mxu0 }
  0x92   :  { %v106_v10 = vrot.slane %v102_v9, 4  ;;  %v112_v11 = vmul.f32 %v102_v9, %v102_v9 }
  0x94   :  { %v107_v13 = vadd.f32 %v106_v10, %v102_v9  ;;  %v113_v14 = vrot.slane %v112_v11, 4 }
  0x96   :  { %v108_v15 = vrot.slane %v107_v13, 2  ;;  %v114_v16 = vadd.f32 %v113_v14, %v112_v11 }
  0x98   :  { %v109_v18 = vadd.f32 %v108_v15, %v107_v13  ;;  %v115_v19 = vrot.slane %v114_v16, 2 }
  0x99   :  { %v104_v20 = vpop.f32.mrf.mxu0 }
  0x9a   :  { %v110_v21 = vrot.slane %v109_v18, 1  ;;  %v116_v22 = vadd.f32 %v115_v19, %v114_v16 }
  0x9c   :  { %v117_v24 = vrot.slane %v116_v22, 1  ;;  %v111_v25 = vadd.f32 %v110_v21, %v109_v18  ;;  %v163_v21 = vld [vmem:[%s709_s5] sm:$0x1] }
  0x9e   :  { %v118_v26 = vadd.f32 %v117_v24, %v116_v22  ;;  %v119_v27 = vmul.f32 0.125, %v111_v25  ;;  %v164_v25 = vld [vmem:[%s710_s6] sm:$0x1] }
  0xa0   :  { %v120_v28 = vmul.f32 0.125, %v118_v26  ;;  %v121_v29 = vmul.f32 %v119_v27, %v119_v27 }
  0xa2   :  { %v122_v30 = vsub.f32 %v120_v28, %v121_v29 }
  0xa4   :  { %v123_v31 = vmax.f32 %v122_v30, 0.0 }
  0xa6   :  { %v124_v32 = vadd.f32 1e-05, %v123_v31 }
  0xa8   :  { %518 = vrsqrt.f32 %v124_v32  ;;  %vm131_vm2 = vweird.f32 %v124_v32 }
  0xae   :  { %v519_v33 = vpop.eup %518 }
  0xaf   :  { %v126_v34 = vmul.f32 %v519_v33, %v124_v32  ;;  %vm132_vm1 = vweird.f32 %v519_v33 }
  0xb0   :  { %vm133_vm3 = vmor %vm131_vm2, %vm132_vm1 }
  0xb1   :  { %v127_v35 = vmul.f32 %v519_v33, %v126_v34 }
  0xb3   :  { %v128_v36 = vmul.f32 0.5, %v127_v35 }
  0xb5   :  { %v129_v37 = vsub.f32 1.5, %v128_v36 }
  0xb7   :  { %v130_v39 = vmul.f32 %v519_v33, %v129_v37 }
  0xb9   :  { %v134_v40 = vsel %vm133_vm3, %v519_v33, %v130_v39 }
  0xba   :  { %v135_v41 = vmul.f32 %v134_v40, %v74_v38 }
  0xbc   :  { %v136_v43 = vmul.f32 %v135_v41, %v119_v27  ;;  %v139_v44 = vperm.slane %v135_v41, 0 }
  0xbe   :  { %v137_v45 = vsub.f32 %v75_v42, %v136_v43  ;;  %v141_v46 = vmul.f32 %v139_v44, %v102_v9 }
  0xc0   :  { %v143_v47 = vperm.slane %v137_v45, 0 }
  0xc2   :  { %v145_v48 = vadd.f32 %v143_v47, %v141_v46 }
  0xc4   :  { %v146_v49 = vmax.f32 %v145_v48, 0.0 }
  0xc6   :  { %v165_v50 = vpack.c.bf16 %v146_v49, %v146_v49 }
  0xc8   :  { %222 = vmatmul.bf16.vlgmr.msra.gmra.mxu1 %v165_v50 }
 0x145   :  { %v223_v56 = vpop.f32.mrf.mxu1 }
 0x146   :  { %v227_v57 = vrot.slane %v223_v56, 4  ;;  %v233_v58 = vmul.f32 %v223_v56, %v223_v56 }
 0x148   :  { %v228_v60 = vadd.f32 %v227_v57, %v223_v56  ;;  %v234_v61 = vrot.slane %v233_v58, 4 }
 0x14a   :  { %v229_v62 = vrot.slane %v228_v60, 2  ;;  %v235_v63 = vadd.f32 %v234_v61, %v233_v58 }
 0x14c   :  { %v230_v1 = vadd.f32 %v229_v62, %v228_v60  ;;  %v236_v2 = vrot.slane %v235_v63, 2  ;;  %v284_v60 = vld [vmem:[%s712_s8] sm:$0x1]  ;;  %s610_s8 = smov [#allocation7]  }
 0x14d   :  { %v225_v3 = vpop.f32.mrf.mxu1 }
 0x14e   :  { %v231_v4 = vrot.slane %v230_v1, 1  ;;  %v237_v5 = vadd.f32 %v236_v2, %v235_v63  ;;  %v388_v63 = vlaneseq }
 0x150   :  { %v238_v7 = vrot.slane %v237_v5, 1  ;;  %v232_v8 = vadd.f32 %v231_v4, %v230_v1  ;;  %v285_v1 = vld [vmem:[%s713_s9] sm:$0x1]  ;;  %v389_v4 = vand.u32 127, %v388_v63  ;;  %s409_s9 = sshll.u32 %s610_s8, 4  ;;  %s410_s9 = int_to_ptr.vmem [resolvable:$true] %s409_s9 }
 0x152   :  { %v239_v9 = vadd.f32 %v238_v7, %v237_v5  ;;  %v240_v10 = vmul.f32 0.125, %v232_v8  ;;  %vm390_vm10 = vcmp.lt.s32.totalorder %v389_v4, 16 }
 0x154   :  { %v241_v11 = vmul.f32 0.125, %v239_v9  ;;  %v242_v12 = vmul.f32 %v240_v10, %v240_v10 }
 0x156   :  { %v243_v13 = vsub.f32 %v241_v11, %v242_v12 }
 0x158   :  { %v244_v14 = vmax.f32 %v243_v13, 0.0 }
 0x15a   :  { %v245_v15 = vadd.f32 1e-05, %v244_v14 }
 0x15c   :  { %520 = vrsqrt.f32 %v245_v15  ;;  %vm252_vm5 = vweird.f32 %v245_v15 }
 0x162   :  { %v521_v16 = vpop.eup %520 }
 0x163   :  { %v247_v17 = vmul.f32 %v521_v16, %v245_v15  ;;  %vm253_vm4 = vweird.f32 %v521_v16 }
 0x164   :  { %vm254_vm6 = vmor %vm252_vm5, %vm253_vm4 }
 0x165   :  { %v248_v18 = vmul.f32 %v521_v16, %v247_v17 }
 0x167   :  { %v249_v19 = vmul.f32 0.5, %v248_v18 }
 0x169   :  { %v250_v20 = vsub.f32 1.5, %v249_v19 }
 0x16b   :  { %v251_v22 = vmul.f32 %v521_v16, %v250_v20 }
 0x16d   :  { %v255_v23 = vsel %vm254_vm6, %v521_v16, %v251_v22 }
 0x16e   :  { %v256_v24 = vmul.f32 %v255_v23, %v163_v21 }
 0x170   :  { %v257_v26 = vmul.f32 %v256_v24, %v240_v10  ;;  %v260_v27 = vperm.slane %v256_v24, 0 }
 0x172   :  { %v258_v28 = vsub.f32 %v164_v25, %v257_v26  ;;  %v262_v29 = vmul.f32 %v260_v27, %v223_v56 }
 0x174   :  { %v264_v30 = vperm.slane %v258_v28, 0 }
 0x176   :  { %v266_v31 = vadd.f32 %v264_v30, %v262_v29 }
 0x178   :  { %v267_v32 = vmax.f32 %v266_v31, 0.0 }
 0x17a   :  { %v286_v33 = vpack.c.bf16 %v267_v32, %v267_v32 }
 0x17c   :  { %343 = vmatmul.bf16.vlgmr.msra.gmra.mxu2 %v286_v33 }
 0x1ff   :  { %v344_v34 = vpop.f32.mrf.mxu2 }
 0x200   :  { %v348_v35 = vrot.slane %v344_v34, 4  ;;  %v354_v36 = vmul.f32 %v344_v34, %v344_v34 }
 0x202   :  { %v349_v37 = vadd.f32 %v348_v35, %v344_v34  ;;  %v355_v38 = vrot.slane %v354_v36, 4 }
 0x204   :  { %v350_v39 = vrot.slane %v349_v37, 2  ;;  %v356_v40 = vadd.f32 %v355_v38, %v354_v36 }
 0x206   :  { %v351_v41 = vadd.f32 %v350_v39, %v349_v37  ;;  %v357_v42 = vrot.slane %v356_v40, 2 }
 0x207   :  { %v346_v43 = vpop.f32.mrf.mxu2 }
 0x208   :  { %v352_v44 = vrot.slane %v351_v41, 1  ;;  %v358_v45 = vadd.f32 %v357_v42, %v356_v40 }
 0x20a   :  { %v359_v46 = vrot.slane %v358_v45, 1  ;;  %v353_v47 = vadd.f32 %v352_v44, %v351_v41 }
 0x20c   :  { %v360_v48 = vadd.f32 %v359_v46, %v358_v45  ;;  %v361_v49 = vmul.f32 0.125, %v353_v47 }
 0x20e   :  { %v362_v50 = vmul.f32 0.125, %v360_v48  ;;  %v363_v51 = vmul.f32 %v361_v49, %v361_v49 }
 0x210   :  { %v364_v52 = vsub.f32 %v362_v50, %v363_v51 }
 0x212   :  { %v365_v53 = vmax.f32 %v364_v52, 0.0 }
 0x214   :  { %v366_v54 = vadd.f32 1e-05, %v365_v53 }
 0x216   :  { %522 = vrsqrt.f32 %v366_v54  ;;  %vm373_vm8 = vweird.f32 %v366_v54 }
 0x21c   :  { %v523_v55 = vpop.eup %522 }
 0x21d   :  { %v368_v56 = vmul.f32 %v523_v55, %v366_v54  ;;  %vm374_vm7 = vweird.f32 %v523_v55 }
 0x21e   :  { %vm375_vm9 = vmor %vm373_vm8, %vm374_vm7 }
 0x21f   :  { %v369_v57 = vmul.f32 %v523_v55, %v368_v56 }
 0x221   :  { %v370_v58 = vmul.f32 0.5, %v369_v57 }
 0x223   :  { %v371_v59 = vsub.f32 1.5, %v370_v58 }
 0x225   :  { %v372_v61 = vmul.f32 %v523_v55, %v371_v59 }
 0x227   :  { %v376_v62 = vsel %vm375_vm9, %v523_v55, %v372_v61 }
 0x228   :  { %v377_v0 = vmul.f32 %v376_v62, %v284_v60 }
 0x22a   :  { %v378_v2 = vmul.f32 %v377_v0, %v361_v49  ;;  %v381_v3 = vperm.slane %v377_v0, 0 }
 0x22c   :  { %v379_v5 = vsub.f32 %v285_v1, %v378_v2  ;;  %v383_v6 = vmul.f32 %v381_v3, %v344_v34 }
 0x22e   :  { %v385_v7 = vperm.slane %v379_v5, 0 }
 0x230   :  { %v387_v8 = vadd.f32 %v385_v7, %v383_v6 }
 0x232   :  { %v391_v9 = vsel %vm390_vm10, %v387_v8, -inf }
 0x233   :  { %392 = vmax.xlane.f32.xlu0 %v391_v9 }
 0x2a6   :  { %v393_v10 = vpop.xlane.xlu0 %392 }
 0x2a7   :  { %v394_v11 = vsub.f32 %v391_v9, %v393_v10 }
 0x2a9   :  { %v395_v12 = vmul.f32 1.442695, %v394_v11 }
 0x2ab   :  { %524 = vpow2.f32 %v395_v12 }
 0x2b1   :  { %v525_v13 = vpop.eup %524 }
 0x2b2   :  { %397 = vadd.xlane.f32.xlu0 %v525_v13 }
 0x325   :  { %v398_v14 = vpop.xlane.xlu0 %397 }
 0x326   :  { %526 = vlog2.f32 %v398_v14 }
 0x32c   :  { %v527_v15 = vpop.eup %526 }
 0x32d   :  { %v400_v16 = vmul.f32 0.6931472, %v527_v15 }
 0x32f   :  { %v401_v17 = vsub.f32 %v394_v11, %v400_v16 }
 0x331   :  { %v402_v18 = vsel %vm390_vm10, %v401_v17, 0.0 }
 0x332   :  { %403 = vst [vmem:[#allocation7] sm:$0xff] %v402_v18 }
 0x333   :  { %414 = dma.vmem_to_hbm [thread:$0]  %s410_s9, 128, %s412_s17, [#allocation4]  }
 0x334   :  { %604 = dma.done.wait [#allocation4], 128  }
 0x335   :  { %605 = vsyncadd [#allocation4], 4294967168 }
 0x336   :  { %419 = vsyncpa [#allocation3], 1 }
 0x337   :  { %420 = vsyncpa [#allocation6], 1 }
 0x338   :  { %421 = vsyncpa [#allocation4], 1 }

</bundles_post_ra>
